<compile_context>
chip_gen: v7x
topology: tpu7x:2x2x1
jax: 0.10.0
libtpu: 0.0.40
codegen_flags: <defaults>
</compile_context>

<pallas_src>
import functools
import math

import jax
import jax.numpy as jnp
from jax.experimental import pallas as pl
from jax.experimental.pallas import tpu as pltpu


def _layernorm_kernel(x_ref, w_ref, b_ref, *rest, eps, hidden, pack):
    """LayerNorm over groups of `hidden` lanes.

    pack == 1 : plain (rows, hidden) layout, reduction over the whole last axis.
    pack  > 1 : lane-dense layout (rows//pack, pack*hidden); per-group mean and
                E[x^2] come from one MXU matmul against a block-diagonal (L, L)
                segment matrix (reduces and broadcasts in a single op, keeps the
                VPU/XLU free and the stores unmasked).
    """
    if pack > 1:
        seg_ref, o_ref = rest
    else:
        (o_ref,) = rest

    x = x_ref[...]
    if x.dtype != jnp.float32:                      # upcast only when needed
        x = x.astype(jnp.float32)

    inv_h = 1.0 / float(hidden)
    if pack > 1:
        seg = seg_ref[...]                          # (L, L) 0/1 block-diagonal
        u = jnp.dot(x, seg, preferred_element_type=jnp.float32) * inv_h
        ex2 = jnp.dot(x * x, seg, preferred_element_type=jnp.float32) * inv_h
    else:
        u = jnp.mean(x, axis=-1, keepdims=True)
        ex2 = jnp.mean(x * x, axis=-1, keepdims=True)

    var = jnp.maximum(ex2 - u * u, 0.0)             # single-sweep variance (f32)
    inv = jax.lax.rsqrt(var + eps)                  # EUP slot -> ~free
    y = (x - u) * inv

    w = w_ref[...]                                  # (1, L) resident
    b = b_ref[...]                                  # (1, L) resident
    if w.dtype != jnp.float32:
        w = w.astype(jnp.float32)
    if b.dtype != jnp.float32:
        b = b.astype(jnp.float32)
    o_ref[...] = (w * y + b).astype(o_ref.dtype)


def _vmem_cap_bytes():
    """Generation-aware VMEM budget: ~3/4 of physical, safe fallback 48 MiB."""
    try:
        phys = int(pltpu.get_tpu_info().vmem_capacity_bytes)
    except Exception:
        phys = 64 << 20                             # v7x physical (smallest)
    return max(32 << 20, (phys * 3) // 4)


def _choose_tile_rows(rows, width, itemsize, vmem_cap):
    """Row tile: ~4 MiB of input per grid step (amortizes ~0.35 us overhead on
    fast-HBM parts), rounded to the dtype-native sublane multiple, capped so
    double-buffered in+out blocks + f32 working values fit the VMEM budget,
    and split into >=2 steps when possible so v7x's two TCs both get work."""
    sub = max(8, 32 // itemsize)                    # 8 f32 / 16 bf16 / 32 int8-fp8
    bytes_per_row = width * itemsize
    target_block_bytes = 4 << 20
    max_block_bytes = max(1 << 20, vmem_cap // 8)
    tile = max(sub, min(target_block_bytes, max_block_bytes) // bytes_per_row)
    tile = max(sub, (tile // sub) * sub)
    if tile >= rows:
        if rows >= 2 * sub:
            return max(sub, ((rows // 2) // sub) * sub)   # >=2 grid steps
        return rows                                       # tiny input: one block
    return tile


def layer_norm(x, weight, bias, eps=1e-12, tile_rows=None):
    orig_shape = x.shape
    hidden = orig_shape[-1]
    rows = math.prod(orig_shape[:-1]) if len(orig_shape) > 1 else 1
    itemsize = x.dtype.itemsize
    vmem_cap = _vmem_cap_bytes()

    # Lane-dense packing: fold `pack` consecutive rows into one 128-lane row.
    pack = 1
    if hidden < 128 and 128 % hidden == 0 and rows % (128 // hidden) == 0:
        pack = 128 // hidden
    # TODO(synk): hidden < 128 with 128 % hidden != 0 (or ragged row counts)
    # still takes the masked-store path; an lcm-based packing would cover it.

    width = hidden * pack
    krows = rows // pack

    x2d = x.reshape(krows, width)                   # contiguous reshape, no copy
    if pack > 1:
        w2d = jnp.tile(weight.reshape(1, hidden), (1, pack))
        b2d = jnp.tile(bias.reshape(1, hidden), (1, pack))
        group = jnp.arange(width, dtype=jnp.int32) // hidden
        seg = (group[:, None] == group[None, :]).astype(jnp.float32)
    else:
        w2d = weight.reshape(1, hidden)
        b2d = bias.reshape(1, hidden)
        seg = None

    if tile_rows is None:
        tile_rows = _choose_tile_rows(krows, width, itemsize, vmem_cap)
    tile_rows = min(tile_rows, krows)

    grid = (pl.cdiv(krows, tile_rows),)             # ragged last block masked

    # VMEM budget from the real footprint: double-buffered in+out blocks,
    # f32 working values, resident params / segment matrix, 2x headroom.
    block_bytes = tile_rows * width * itemsize
    f32_work = tile_rows * width * 4
    seg_bytes = (width * width * 4) if pack > 1 else 0
    footprint = 4 * block_bytes + f32_work + 2 * (2 * width * itemsize + seg_bytes)
    vmem_limit = int(min(vmem_cap, max(32 << 20, 2 * footprint)))

    in_specs = [
        pl.BlockSpec((tile_rows, width), lambda i: (i, 0)),
        pl.BlockSpec((1, width), lambda i: (0, 0)),
        pl.BlockSpec((1, width), lambda i: (0, 0)),
    ]
    args = [x2d, w2d, b2d]
    if pack > 1:
        in_specs.append(pl.BlockSpec((width, width), lambda i: (0, 0)))
        args.append(seg)

    # TODO(synk): sweep pipeline_mode=pl.Buffered(3) on the x BlockSpec on v7x
    # (extra input buffer fits the budget; keep whichever measures faster).
    kernel = functools.partial(_layernorm_kernel, eps=eps, hidden=hidden, pack=pack)

    out = pl.pallas_call(
        kernel,
        out_shape=jax.ShapeDtypeStruct((krows, width), x.dtype),
        grid_spec=pltpu.PrefetchScalarGridSpec(
            num_scalar_prefetch=0,
            grid=grid,
            in_specs=in_specs,
            out_specs=pl.BlockSpec((tile_rows, width), lambda i: (i, 0)),
        ),
        compiler_params=pltpu.CompilerParams(
            dimension_semantics=("parallel",),
            vmem_limit_bytes=vmem_limit,
        ),
    )(*args)

    return out.reshape(orig_shape)


if __name__ == "__main__":
    key = jax.random.PRNGKey(0)
    batch, seq, hidden = 2, 8, 32
    x = jax.random.normal(key, (batch, seq, hidden), dtype=jnp.float32)

    # deterministic parameter init (matches nn.Parameter(torch.ones/zeros))
    weight = jnp.ones((hidden,), dtype=jnp.float32)
    bias = jnp.zeros((hidden,), dtype=jnp.float32)

    y = layer_norm(x, weight, bias, eps=1e-12)
    y = jax.block_until_ready(y)

    # reference check in plain JAX (same math as the PyTorch module)
    u = jnp.mean(x, axis=-1, keepdims=True)
    s = jnp.mean((x - u) ** 2, axis=-1, keepdims=True)
    ref = weight * ((x - u) / jnp.sqrt(s + 1e-12)) + bias
    assert jnp.allclose(y, ref, atol=1e-5, rtol=1e-5), "mismatch vs reference"

    print("KERNEL_OK")
</pallas_src>

<mosaic_0001>
module attributes {stable_mosaic.version = 11 : i64} {
  func.func @_layernorm_kernel(%arg0: i32, %arg1: memref<4x128xf32, #tpu.memory_space<vmem>>, %arg2: memref<1x128xf32, #tpu.memory_space<vmem>>, %arg3: memref<1x128xf32, #tpu.memory_space<vmem>>, %arg4: memref<128x128xf32, #tpu.memory_space<vmem>>, %arg5: memref<4x128xf32, #tpu.memory_space<vmem>>) attributes {dimension_semantics = [#tpu.dimension_semantics<parallel>], iteration_bounds = array<i64: 1>, scalar_prefetch = 0 : i64, scratch_operands = 0 : i64, tpu.core_type = #tpu.core_type<tc>, window_params = [{transform_indices = @transform_0, window_bounds = array<i64: 4, 128>}, {pipeline_mode = #tpu.pipeline_mode<synchronous>, transform_indices = @transform_1, window_bounds = array<i64: 1, 128>}, {pipeline_mode = #tpu.pipeline_mode<synchronous>, transform_indices = @transform_2, window_bounds = array<i64: 1, 128>}, {pipeline_mode = #tpu.pipeline_mode<synchronous>, transform_indices = @transform_3, window_bounds = array<i64: 128, 128>}, {transform_indices = @transform_4, window_bounds = array<i64: 4, 128>}]} {
    %c0 = arith.constant 0 : index
    %c0_0 = arith.constant 0 : index
    %0 = vector.load %arg1[%c0, %c0_0] : memref<4x128xf32, #tpu.memory_space<vmem>>, vector<4x128xf32>
    %c0_1 = arith.constant 0 : index
    %c0_2 = arith.constant 0 : index
    %1 = vector.load %arg4[%c0_1, %c0_2] : memref<128x128xf32, #tpu.memory_space<vmem>>, vector<128x128xf32>
    %cst = arith.constant dense<0.000000e+00> : vector<4x128xf32>
    %2 = tpu.matmul %0, %1, %cst {dimension_numbers = #tpu.dot_dimension_numbers<[1], [0], [0], [1], [0, 0, 1, 1], [], []>} : vector<4x128xf32>, vector<128x128xf32>, vector<4x128xf32> -> vector<4x128xf32>
    %cst_3 = arith.constant 3.125000e-02 : f32
    %3 = vector.broadcast %cst_3 : f32 to vector<4x128xf32>
    %4 = arith.mulf %2, %3 : vector<4x128xf32>
    %5 = arith.mulf %0, %0 : vector<4x128xf32>
    %cst_4 = arith.constant dense<0.000000e+00> : vector<4x128xf32>
    %6 = tpu.matmul %5, %1, %cst_4 {dimension_numbers = #tpu.dot_dimension_numbers<[1], [0], [0], [1], [0, 0, 1, 1], [], []>} : vector<4x128xf32>, vector<128x128xf32>, vector<4x128xf32> -> vector<4x128xf32>
    %cst_5 = arith.constant 3.125000e-02 : f32
    %7 = vector.broadcast %cst_5 : f32 to vector<4x128xf32>
    %8 = arith.mulf %6, %7 : vector<4x128xf32>
    %9 = arith.mulf %4, %4 : vector<4x128xf32>
    %10 = arith.subf %8, %9 : vector<4x128xf32>
    %cst_6 = arith.constant 0.000000e+00 : f32
    %11 = vector.broadcast %cst_6 : f32 to vector<4x128xf32>
    %12 = arith.maximumf %10, %11 : vector<4x128xf32>
    %cst_7 = arith.constant 9.99999996E-13 : f32
    %13 = vector.broadcast %cst_7 : f32 to vector<4x128xf32>
    %14 = arith.addf %12, %13 : vector<4x128xf32>
    %15 = math.rsqrt %14 : vector<4x128xf32>
    %16 = arith.subf %0, %4 : vector<4x128xf32>
    %17 = arith.mulf %16, %15 : vector<4x128xf32>
    %c0_8 = arith.constant 0 : index
    %c0_9 = arith.constant 0 : index
    %18 = vector.load %arg2[%c0_8, %c0_9] : memref<1x128xf32, #tpu.memory_space<vmem>>, vector<1x128xf32>
    %c0_10 = arith.constant 0 : index
    %c0_11 = arith.constant 0 : index
    %19 = vector.load %arg3[%c0_10, %c0_11] : memref<1x128xf32, #tpu.memory_space<vmem>>, vector<1x128xf32>
    %20 = vector.broadcast %18 : vector<1x128xf32> to vector<4x128xf32>
    %21 = arith.mulf %20, %17 : vector<4x128xf32>
    %22 = vector.broadcast %19 : vector<1x128xf32> to vector<4x128xf32>
    %23 = arith.addf %21, %22 : vector<4x128xf32>
    %c0_12 = arith.constant 0 : index
    %c0_13 = arith.constant 0 : index
    %24 = vector.load %arg5[%c0_12, %c0_13] : memref<4x128xf32, #tpu.memory_space<vmem>>, vector<4x128xf32>
    tpu.vector_store %arg5[%c0_12, %c0_13], %23 {strides = array<i32>} : memref<4x128xf32, #tpu.memory_space<vmem>>, vector<4x128xf32>,
    return
  }
  func.func @transform_0(%arg0: i32) -> (i32, i32) {
    %c0_i32 = arith.constant 0 : i32
    %c0_i32_0 = arith.constant 0 : i32
    return %arg0, %c0_i32 : i32, i32
  }
  func.func @transform_1(%arg0: i32) -> (i32, i32) {
    %c0_i32 = arith.constant 0 : i32
    %c0_i32_0 = arith.constant 0 : i32
    %c0_i32_1 = arith.constant 0 : i32
    return %c0_i32, %c0_i32_0 : i32, i32
  }
  func.func @transform_2(%arg0: i32) -> (i32, i32) {
    %c0_i32 = arith.constant 0 : i32
    %c0_i32_0 = arith.constant 0 : i32
    %c0_i32_1 = arith.constant 0 : i32
    return %c0_i32, %c0_i32_0 : i32, i32
  }
  func.func @transform_3(%arg0: i32) -> (i32, i32) {
    %c0_i32 = arith.constant 0 : i32
    %c0_i32_0 = arith.constant 0 : i32
    %c0_i32_1 = arith.constant 0 : i32
    return %c0_i32, %c0_i32_0 : i32, i32
  }
  func.func @transform_4(%arg0: i32) -> (i32, i32) {
    %c0_i32 = arith.constant 0 : i32
    %c0_i32_0 = arith.constant 0 : i32
    return %arg0, %c0_i32 : i32, i32
  }
}

</mosaic_0001>

<bundles_post_ra>
// kernel: tpu_custom_call.1
= control target key start
LH: loop header
LB: loop body
LE: loop exit
PB: predicated region body
PF: predicated region fallthrough
CT: control target
= control target key end

     0   :  { %9 = vsyncpa [#allocation3], 0  ;;  %s562_s0 = inlined_call_operand.hbm [shape: f32[4,128], index: 0, kind: input, shape index: {}]   ;;  %s563_s1 = inlined_call_operand.vmem [shape: f32[1,128], index: 1, kind: input, shape index: {}]   ;;  %s564_s2 = inlined_call_operand.vmem [shape: f32[1,128], index: 2, kind: input, shape index: {}]   ;;  %s565_s3 = inlined_call_operand.hbm [shape: f32[128,128], index: 3, kind: input, shape index: {}]   ;;  %s566_s4 = inlined_call_operand.hbm [shape: f32[4,128], index: 4, kind: output, shape index: {}]  }
   0x1   :  { %10 = vsyncpa [#allocation6], 0 }
   0x2   :  { %11 = vsyncpa [#allocation4], 0  ;;  %s480_s15 = smov [#allocation2]   ;;  %s481_s17 = smov [#allocation5]  }
   0x3   :  { %s18_s16 = sshll.u32 %s480_s15, 4  ;;  %s31_s18 = sshll.u32 %s481_s17, 4  ;;  %s19_s16 = int_to_ptr.vmem [resolvable:$true] %s18_s16  ;;  %s513_s18 = int_to_ptr.vmem [resolvable:$true] %s31_s18 }
   0x4   :  { %s408_s21 = scalar_lea.hbm %s562_s0, 64 }
   0x5   :  { %p409_p0 = scmp.ne.s32.totalorder %s562_s0, %s408_s21  ;;  %p412_p1 = scmp.lt.u32.totalorder %s408_s21, %s562_s0 }
   0x7   :  { %p414_p2 = pnand %p412_p1, %p409_p0 }
   0x9   :  { %417 = shalt.err (!%p414_p2)
}
   0xa   :  { %s418_s26 = scalar_lea.vmem %s19_s16, 64  ;;  %p423_p4 = scmp.lt.s32.totalorder %s19_s16, %s19_s16 }
   0xb   :  { %p419_p3 = scmp.ne.s32.totalorder %s19_s16, %s418_s26  ;;  %p424_p5 = scmp.lt.s32.totalorder %s418_s26, %s418_s26 }
   0xd   :  { %p425_p6 = por %p424_p5, %p423_p4 }
   0xf   :  { %p426_p7 = pnand %p425_p6, %p419_p3 }
  0x11   :  { %429 = shalt.err (!%p426_p7)
}
  0x12   :  { %21 = dma.hbm_to_vmem [thread:$0]  %s562_s0, 64, %s19_s16, [#allocation3]  }
  0x13   :  { %s430_s5 = scalar_lea.hbm %s565_s3, 2048 }
  0x14   :  { %p431_p8 = scmp.ne.s32.totalorder %s565_s3, %s430_s5  ;;  %p434_p9 = scmp.lt.u32.totalorder %s430_s5, %s565_s3 }
  0x16   :  { %p436_p10 = pnand %p434_p9, %p431_p8 }
  0x18   :  { %439 = shalt.err (!%p436_p10)
}
  0x19   :  { %s440_s10 = scalar_lea.vmem %s513_s18, 2048  ;;  %p445_p12 = scmp.lt.s32.totalorder %s513_s18, %s513_s18 }
  0x1a   :  { %p441_p11 = scmp.ne.s32.totalorder %s513_s18, %s440_s10  ;;  %p446_p13 = scmp.lt.s32.totalorder %s440_s10, %s440_s10 }
  0x1c   :  { %p447_p0 = por %p446_p13, %p445_p12 }
  0x1e   :  { %p448_p1 = pnand %p447_p0, %p441_p11 }
  0x20   :  { %451 = shalt.err (!%p448_p1)
}
  0x21   :  { %s482_s0 = smov 128   ;;  %s483_s11 = smov 8  }
  0x22   :  { %37 = dma.hbm_to_vmem [thread:$0]  %s565_s3, 2048, %s513_s18, [#allocation6], %s482_s0, %s482_s0, %s483_s11  }
  0x23   :  { %474 = dma.done.wait [#allocation3], 64  }
  0x24   :  { %475 = vsyncadd [#allocation3], 4294967232 }
  0x25   :  { %476 = dma.done.wait [#allocation6], 2048  }
  0x26   :  { %477 = vsyncadd [#allocation6], 4294965248  ;;  %v484_v0 = vmov 0.0|0.0   ;;  %vm485_vm0 = vmmov 0   ;;  %v486_v1 = vmov 0.0   ;;  %v45_v2 = vld [vmem:[#allocation5] sm:$0xff] }
  0x27   :  { %350 = vmatprep.subr.bf16.mxu0 %v484_v0  ;;  %374 = vmatprep.subr.bf16.mxu1 %v484_v0  ;;  %v46_v3 = vld [vmem:[#allocation5 + $0x8] sm:$0xff]  ;;  %v47_v4 = vld [vmem:[#allocation5 + $0x10] sm:$0xff]  ;;  %v48_v6 = vld [vmem:[#allocation5 + $0x18] sm:$0xff]  ;;  %s487_s17 = smov [#allocation7]  }
  0x28   :  { %312 = vmatprep.mubr.msk.f32.mxu0 %vm485_vm0, %v486_v1  ;;  %347 = vmatprep.mubr.msk.f32.mxu1 %vm485_vm0, %v486_v1  ;;  %v351_v5 = vpack.c.bf16 %v46_v3, %v45_v2  ;;  %v354_v7 = vpack.c.bf16 %v48_v6, %v47_v4  ;;  %v49_v8 = vld [vmem:[#allocation5 + $0x20] sm:$0xff]  ;;  %v50_v9 = vld [vmem:[#allocation5 + $0x28] sm:$0xff]  ;;  %v51_v11 = vld [vmem:[#allocation5 + $0x30] sm:$0xff]  ;;  %s234_s18 = sshll.u32 %s487_s17, 4  ;;  %s235_s18 = int_to_ptr.vmem [resolvable:$true] %s234_s18 }
  0x29   :  { %v357_v10 = vpack.c.bf16 %v50_v9, %v49_v8  ;;  %v52_v12 = vld [vmem:[#allocation5 + $0x38] sm:$0xff]  ;;  %v53_v14 = vld [vmem:[#allocation5 + $0x40] sm:$0xff]  ;;  %v54_v15 = vld [vmem:[#allocation5 + $0x48] sm:$0xff]  ;;  %s452_s19 = scalar_lea.vmem %s235_s18, 64  ;;  %p457_p3 = scmp.lt.s32.totalorder %s235_s18, %s235_s18 }
  0x2a   :  { %352 = vmatpush3.bf16.msra.mxu0 %v351_v5  ;;  %376 = vmatpush3.bf16.msra.mxu1 %v351_v5  ;;  %v360_v13 = vpack.c.bf16 %v52_v12, %v51_v11  ;;  %v363_v16 = vpack.c.bf16 %v54_v15, %v53_v14  ;;  %v55_v17 = vld [vmem:[#allocation5 + $0x50] sm:$0xff]  ;;  %v56_v18 = vld [vmem:[#allocation5 + $0x58] sm:$0xff]  ;;  %v57_v20 = vld [vmem:[#allocation5 + $0x60] sm:$0xff]  ;;  %p453_p2 = scmp.ne.s32.totalorder %s235_s18, %s452_s19  ;;  %p458_p4 = scmp.lt.s32.totalorder %s452_s19, %s452_s19 }
  0x2b   :  { %353 = vmatprep.subr.bf16.mxu0 %v484_v0  ;;  %377 = vmatprep.subr.bf16.mxu1 %v484_v0  ;;  %v366_v19 = vpack.c.bf16 %v56_v18, %v55_v17  ;;  %v58_v21 = vld [vmem:[#allocation5 + $0x68] sm:$0xff]  ;;  %v59_v23 = vld [vmem:[#allocation5 + $0x70] sm:$0xff]  ;;  %v60_v24 = vld [vmem:[#allocation5 + $0x78] sm:$0xff] }
  0x2c   :  { %v369_v22 = vpack.c.bf16 %v58_v21, %v57_v20  ;;  %v372_v25 = vpack.c.bf16 %v60_v24, %v59_v23  ;;  %v44_v26 = vld [vmem:[#allocation2] sm:$0xf]  ;;  %p459_p5 = por %p458_p4, %p457_p3 }
  0x2d   :  { %v132_v27 = vmul.f32 %v44_v26, %v44_v26  ;;  %v244_v40 = vld [vmem:[%s563_s1] ss:$0 sm:$0xff] }
  0x2e   :  { %355 = vmatpush3.bf16.msra.mxu0 %v354_v7  ;;  %379 = vmatpush3.bf16.msra.mxu1 %v354_v7  ;;  %v245_v42 = vld [vmem:[%s564_s2] ss:$0 sm:$0xff]  ;;  %p460_p6 = pnand %p459_p5, %p453_p2 }
  0x2f   :  { %356 = vmatprep.subr.bf16.mxu0 %v484_v0  ;;  %380 = vmatprep.subr.bf16.mxu1 %v484_v0 }
  0x32   :  { %358 = vmatpush3.bf16.msra.mxu0 %v357_v10  ;;  %382 = vmatpush3.bf16.msra.mxu1 %v357_v10 }
  0x33   :  { %359 = vmatprep.subr.bf16.mxu0 %v484_v0  ;;  %383 = vmatprep.subr.bf16.mxu1 %v484_v0 }
  0x36   :  { %361 = vmatpush3.bf16.msra.mxu0 %v360_v13  ;;  %385 = vmatpush3.bf16.msra.mxu1 %v360_v13 }
  0x37   :  { %362 = vmatprep.subr.bf16.mxu0 %v484_v0  ;;  %386 = vmatprep.subr.bf16.mxu1 %v484_v0 }
  0x3a   :  { %364 = vmatpush3.bf16.msra.mxu0 %v363_v16  ;;  %388 = vmatpush3.bf16.msra.mxu1 %v363_v16 }
  0x3b   :  { %365 = vmatprep.subr.bf16.mxu0 %v484_v0  ;;  %389 = vmatprep.subr.bf16.mxu1 %v484_v0 }
  0x3e   :  { %367 = vmatpush3.bf16.msra.mxu0 %v366_v19  ;;  %391 = vmatpush3.bf16.msra.mxu1 %v366_v19 }
  0x3f   :  { %368 = vmatprep.subr.bf16.mxu0 %v484_v0  ;;  %392 = vmatprep.subr.bf16.mxu1 %v484_v0 }
  0x42   :  { %370 = vmatpush3.bf16.msra.mxu0 %v369_v22  ;;  %394 = vmatpush3.bf16.msra.mxu1 %v369_v22 }
  0x43   :  { %371 = vmatprep.subr.bf16.mxu0 %v484_v0  ;;  %395 = vmatprep.subr.bf16.mxu1 %v484_v0 }
  0x46   :  { %373 = vmatpush3.bf16.msra.mxu0 %v372_v25  ;;  %397 = vmatpush3.bf16.msra.mxu1 %v372_v25 }
  0x49   :  { %313 = vmatmul.mubr.f32.vlgmr.msra.gmra.mrb[0].mxu0 %v44_v26  ;;  %348 = vmatmul.mubr.f32.vlgmr.msra.gmra.mrb[0].mxu1 %v132_v27 }
 0x11c   :  { %v127_v28 = vpop.f32.mrb[0].mxu0  ;;  %v199_v29 = vpop.f32.mrb[0].mxu1 }
 0x11d   :  { %v131_v30 = vmul.f32 0.03125, %v127_v28  ;;  %v314_v31 = vpop.f32.mrb[1].mxu0  ;;  %v203_v32 = vmul.f32 0.03125, %v199_v29  ;;  %v349_v33 = vpop.f32.mrb[1].mxu1 }
 0x11f   :  { %v204_v34 = vmul.f32 %v131_v30, %v131_v30  ;;  %v209_v38 = vsub.f32 %v44_v26, %v131_v30 }
 0x121   :  { %v205_v35 = vsub.f32 %v203_v32, %v204_v34 }
 0x123   :  { %v206_v36 = vmax.f32 %v205_v35, 0.0 }
 0x125   :  { %v207_v37 = vadd.f32 1e-12, %v206_v36 }
 0x127   :  { %406 = vrsqrt.f32 %v207_v37 }
 0x131   :  { %v407_v39 = vpop.eup %406 }
 0x132   :  { %v210_v41 = vmul.f32 %v407_v39, %v209_v38 }
 0x134   :  { %v219_v43 = vmul.f32 %v244_v40, %v210_v41 }
 0x136   :  { %v226_v44 = vadd.f32 %v245_v42, %v219_v43 }
 0x138   :  { %227 = vst [vmem:[#allocation7] sm:$0xf] %v226_v44 }
 0x139   :  { %463 = shalt.err (!%p460_p6)
}
 0x13a   :  { %s464_s21 = scalar_lea.hbm %s566_s4, 64 }
 0x13b   :  { %p465_p7 = scmp.ne.s32.totalorder %s566_s4, %s464_s21  ;;  %p468_p8 = scmp.lt.u32.totalorder %s464_s21, %s566_s4 }
 0x13d   :  { %p470_p9 = pnand %p468_p8, %p465_p7 }
 0x13f   :  { %473 = shalt.err (!%p470_p9)
}
 0x140   :  { %237 = dma.vmem_to_hbm [thread:$0]  %s235_s18, 64, %s566_s4, [#allocation4]  }
 0x141   :  { %478 = dma.done.wait [#allocation4], 64  }
 0x142   :  { %479 = vsyncadd [#allocation4], 4294967232 }
 0x143   :  { %241 = vsyncpa [#allocation3], 1 }
 0x144   :  { %242 = vsyncpa [#allocation6], 1 }
 0x145   :  { %243 = vsyncpa [#allocation4], 1 }

</bundles_post_ra>
